<compile_context>
chip_gen: v5e
topology: v5e:2x2
jax: 0.10.0
libtpu: 0.0.40
codegen_flags: <defaults>
</compile_context>

<pallas_src>
import math

import jax
import jax.numpy as jnp
from jax.experimental import pallas as pl
from jax.experimental.pallas import tpu as pltpu


def _regress_kernel(inp_ref, w_ref, out_ref):
    # inp_ref: (TN, HW) original dtype
    # w_ref:   (2, HW) f32, row 0 = wx_flat, row 1 = wy_flat
    # out_ref: (2, TN) f32, row 0 = expected x, row 1 = expected y
    e = jnp.exp(inp_ref[...].astype(jnp.float32))          # exp/accumulate in f32

    wx = w_ref[0:1, :]                                      # (1, HW), broadcast over rows
    wy = w_ref[1:2, :]

    s = jnp.sum(e, axis=1)                                  # (TN,)
    sx = jnp.sum(e * wx, axis=1)                            # (TN,)
    sy = jnp.sum(e * wy, axis=1)                            # (TN,)

    # One divide per row replaces the H*W-wide elementwise normalize; exact
    # division (not approx reciprocal) keeps full f32 precision at negligible cost.
    x = sx / s
    y = sy / s
    out_ref[...] = jnp.stack([x, y], axis=0).astype(out_ref.dtype)   # (2, TN) lane-dense


def make_coord_weights(height, width, dtype=jnp.float32):
    # Matches the torch buffers, flattened row-major over (H, W):
    #   wx[h*W + w] = w + 0.5 ; wy[h*W + w] = h + 0.5
    wx = jnp.tile(jnp.arange(width, dtype=dtype) + 0.5, height)       # (H*W,)
    wy = jnp.repeat(jnp.arange(height, dtype=dtype) + 0.5, width)     # (H*W,)
    return jnp.stack([wx, wy], axis=0)                                # (2, H*W)


def _pick_row_tile(n, hw, itemsize):
    """Choose the N-tile. Keep double-buffered input blocks <= ~8 MiB (fits the
    default scoped VMEM on all of v5e/v6e/v7x and leaves pipelining headroom)."""
    budget = 8 * 1024 * 1024
    cap = (budget // (2 * hw * itemsize)) // 128 * 128
    cap = max(128, min(1024, cap))
    if n <= cap:
        return n, 1, n                        # single block: no padding at all
    n_pad = ((n + cap - 1) // cap) * cap      # multi-block: TN is a multiple of 128
    return cap, n_pad // cap, n_pad


def regress_predictor(inp, height, width):
    """inp: (..., H, W). Returns (..., 2) = [expected_x, expected_y] in f32."""
    assert inp.shape[-2:] == (height, width)
    lead = inp.shape[:-2]
    hw = height * width
    n = math.prod(lead) if lead else 1

    flat = inp.reshape(n, hw)                 # stream original dtype (bf16 stays bf16)
    tn, grid_n, n_pad = _pick_row_tile(n, hw, jnp.dtype(flat.dtype).itemsize)
    if n_pad != n:
        # TODO(synk): ragged tail handled by zero-padding (one extra HBM pass);
        # could be replaced by in-kernel masking of the last tile.
        flat = jnp.pad(flat, ((0, n_pad - n), (0, 0)))

    weights = make_coord_weights(height, width)

    out_2n = pl.pallas_call(
        _regress_kernel,
        out_shape=jax.ShapeDtypeStruct((2, n_pad), jnp.float32),
        grid_spec=pltpu.PrefetchScalarGridSpec(
            num_scalar_prefetch=0,
            grid=(grid_n,),
            in_specs=[
                pl.BlockSpec((tn, hw), lambda i: (i, 0)),
                pl.BlockSpec((2, hw), lambda i: (0, 0)),
            ],
            out_specs=pl.BlockSpec((2, tn), lambda i: (0, i)),
        ),
        compiler_params=pltpu.CompilerParams(
            dimension_semantics=("parallel",)),
    )(flat, weights)

    return out_2n[:, :n].T.reshape(*lead, 2)


def _reference(inp, height, width):
    wx = (jnp.arange(width, dtype=jnp.float32) + 0.5)[None, :]
    wy = (jnp.arange(height, dtype=jnp.float32) + 0.5)[:, None]
    e = jnp.exp(inp.astype(jnp.float32))
    p = e / e.sum(axis=-1, keepdims=True).sum(axis=-2, keepdims=True)
    x = (p * wx).sum(axis=(-1, -2))
    y = (p * wy).sum(axis=(-1, -2))
    return jnp.stack([x, y], axis=-1)


if __name__ == "__main__":
    # Small shape matching the module spec: (B, C, H, W) = (2, 4, 16, 16).
    B, C, H, W = 2, 4, 16, 16
    x = jax.random.normal(jax.random.PRNGKey(0), (B, C, H, W), dtype=jnp.float32)

    out = jax.block_until_ready(regress_predictor(x, H, W))
    ref = _reference(x, H, W)
    assert out.shape == (B, C, 2), out.shape
    assert jnp.allclose(out, ref, rtol=1e-5, atol=1e-4), (out, ref)

    # Medium shape: exercises grid > 1 (TN=1024) and the ragged-tail pad path.
    B2, C2 = 3, 500
    x2 = jax.random.normal(jax.random.PRNGKey(1), (B2, C2, H, W), dtype=jnp.float32)
    out2 = jax.block_until_ready(regress_predictor(x2, H, W))
    ref2 = _reference(x2, H, W)
    assert out2.shape == (B2, C2, 2), out2.shape
    assert jnp.allclose(out2, ref2, rtol=1e-5, atol=1e-4)

    print("KERNEL_OK")
</pallas_src>

<mosaic_0001>
module attributes {stable_mosaic.version = 11 : i64} {
  func.func @_regress_kernel(%arg0: i32, %arg1: memref<8x256xf32, #tpu.memory_space<vmem>>, %arg2: memref<2x256xf32, #tpu.memory_space<vmem>>, %arg3: memref<2x8xf32, #tpu.memory_space<vmem>>) attributes {dimension_semantics = [#tpu.dimension_semantics<parallel>], iteration_bounds = array<i64: 1>, scalar_prefetch = 0 : i64, scratch_operands = 0 : i64, tpu.core_type = #tpu.core_type<tc>, window_params = [{transform_indices = @transform_0, window_bounds = array<i64: 8, 256>}, {pipeline_mode = #tpu.pipeline_mode<synchronous>, transform_indices = @transform_1, window_bounds = array<i64: 2, 256>}, {transform_indices = @transform_2, window_bounds = array<i64: 2, 8>}]} {
    %c0 = arith.constant 0 : index
    %c0_0 = arith.constant 0 : index
    %0 = vector.load %arg1[%c0, %c0_0] : memref<8x256xf32, #tpu.memory_space<vmem>>, vector<8x256xf32>
    %1 = math.exp %0 : vector<8x256xf32>
    %c0_1 = arith.constant 0 : index
    %c0_2 = arith.constant 0 : index
    %2 = vector.load %arg2[%c0_1, %c0_2] : memref<2x256xf32, #tpu.memory_space<vmem>>, vector<1x256xf32>
    %c1 = arith.constant 1 : index
    %c0_3 = arith.constant 0 : index
    %3 = vector.load %arg2[%c1, %c0_3] : memref<2x256xf32, #tpu.memory_space<vmem>>, vector<1x256xf32>
    %cst = arith.constant dense<0.000000e+00> : vector<8xf32>
    %4 = vector.multi_reduction <add>, %1, %cst [1] : vector<8x256xf32> to vector<8xf32>
    %5 = vector.broadcast %2 : vector<1x256xf32> to vector<8x256xf32>
    %6 = arith.mulf %1, %5 : vector<8x256xf32>
    %cst_4 = arith.constant dense<0.000000e+00> : vector<8xf32>
    %7 = vector.multi_reduction <add>, %6, %cst_4 [1] : vector<8x256xf32> to vector<8xf32>
    %8 = vector.broadcast %3 : vector<1x256xf32> to vector<8x256xf32>
    %9 = arith.mulf %1, %8 : vector<8x256xf32>
    %cst_5 = arith.constant dense<0.000000e+00> : vector<8xf32>
    %10 = vector.multi_reduction <add>, %9, %cst_5 [1] : vector<8x256xf32> to vector<8xf32>
    %11 = arith.divf %7, %4 : vector<8xf32>
    %12 = arith.divf %10, %4 : vector<8xf32>
    %13 = vector.shape_cast %11 : vector<8xf32> to vector<1x8xf32>
    %14 = vector.shape_cast %12 : vector<8xf32> to vector<1x8xf32>
    %15 = tpu.concatenate %13, %14 in 0 : vector<1x8xf32>, vector<1x8xf32> -> vector<2x8xf32>
    %c0_6 = arith.constant 0 : index
    %c0_7 = arith.constant 0 : index
    %16 = vector.load %arg3[%c0_6, %c0_7] : memref<2x8xf32, #tpu.memory_space<vmem>>, vector<2x8xf32>
    tpu.vector_store %arg3[%c0_6, %c0_7], %15 {strides = array<i32>} : memref<2x8xf32, #tpu.memory_space<vmem>>, vector<2x8xf32>,
    return
  }
  func.func @transform_0(%arg0: i32) -> (i32, i32) {
    %c0_i32 = arith.constant 0 : i32
    %c0_i32_0 = arith.constant 0 : i32
    return %arg0, %c0_i32 : i32, i32
  }
  func.func @transform_1(%arg0: i32) -> (i32, i32) {
    %c0_i32 = arith.constant 0 : i32
    %c0_i32_0 = arith.constant 0 : i32
    %c0_i32_1 = arith.constant 0 : i32
    return %c0_i32, %c0_i32_0 : i32, i32
  }
  func.func @transform_2(%arg0: i32) -> (i32, i32) {
    %c0_i32 = arith.constant 0 : i32
    %c0_i32_0 = arith.constant 0 : i32
    return %c0_i32, %arg0 : i32, i32
  }
}

</mosaic_0001>

<bundles_post_ra>
// kernel: tpu_custom_call.1
= control target key start
LH: loop header
LB: loop body
LE: loop exit
PB: predicated region body
PF: predicated region fallthrough
CT: control target
= control target key end

     0   :  { %7 = vsyncpa [#allocation3], 0  ;;  %s232_s0 = inlined_call_operand.hbm [shape: f32[8,256], index: 0, kind: input, shape index: {}]   ;;  %s233_s1 = inlined_call_operand.hbm [shape: f32[2,256], index: 1, kind: input, shape index: {}]   ;;  %s234_s2 = inlined_call_operand.hbm [shape: f32[2,8], index: 2, kind: output, shape index: {}]  }
   0x1   :  { %8 = vsyncpa [#allocation6], 0 }
   0x2   :  { %9 = vsyncpa [#allocation4], 0  ;;  %s15_s11 = sshll.u32 %s232_s0, 4  ;;  %s205_s12 = smov [#allocation2]   ;;  %s16_s11 = int_to_ptr.hbm [resolvable:$true] %s15_s11 }
   0x3   :  { %s17_s13 = sshll.u32 %s205_s12, 4  ;;  %s26_s16 = sshll.u32 %s233_s1, 4  ;;  %s18_s13 = int_to_ptr.vmem [resolvable:$true] %s17_s13  ;;  %s27_s16 = int_to_ptr.hbm [resolvable:$true] %s26_s16 }
   0x4   :  { %20 = dma.hbm_to_vmem [thread:$0]  %s16_s11, 256, %s18_s13, [#allocation3]  }
   0x5   :  { %s206_s17 = smov [#allocation5]  }
   0x6   :  { %s28_s18 = sshll.u32 %s206_s17, 4  ;;  %s29_s18 = int_to_ptr.vmem [resolvable:$true] %s28_s18 }
   0x7   :  { %31 = dma.hbm_to_vmem [thread:$0]  %s27_s16, 64, %s29_s18, [#allocation6]  }
   0x8   :  { %199 = dma.done.wait [#allocation3], 256  }
   0x9   :  { %200 = vsyncadd [#allocation3], 4294967040 }
   0xa   :  { %201 = dma.done.wait [#allocation6], 64  }
   0xb   :  { %202 = vsyncadd [#allocation6], 4294967232  ;;  %v40_v0 = vld [vmem:[#allocation2] sm:$0xff]  ;;  %v41_v1 = vld [vmem:[#allocation2 + $0x8] sm:$0xff]  ;;  %v89_v24 = vlaneseq  ;;  %s207_s0 = smov [#allocation7]   ;;  %s107_s21 = sshll.u32 %s234_s2, 4  ;;  %s108_s21 = int_to_ptr.hbm [resolvable:$true] %s107_s21 }
   0xc   :  { %v42_v2 = vmul.f32 1.442695, %v40_v0  ;;  %v44_v3 = vmul.f32 1.442695, %v41_v1  ;;  %s105_s1 = sshll.u32 %s207_s0, 4  ;;  %vm96_vm4 = vcmask 1040384   ;;  %s106_s1 = int_to_ptr.vmem [resolvable:$true] %s105_s1 }
   0xd   :  { %v48_v4 = vld [vmem:[#allocation5 + $0x1] ss:$2 sm:$0x3]  ;;  %v46_v6 = vld [vmem:[#allocation5] ss:$2 sm:$0x3] }
   0xe   :  { %121 = vpow2.f32 %v42_v2  ;;  %v63_v5 = vperm.slane %v48_v4, 0  ;;  %v64_v7 = vperm.slane %v48_v4, 1  ;;  %v53_v9 = vperm.slane %v46_v6, 0 }
   0xf   :  { %123 = vpow2.f32 %v44_v3  ;;  %v54_v10 = vperm.slane %v46_v6, 1  ;;  %v90_v31 = vand.u32 127, %v89_v24  ;;  %vm98_vm5 = vcmask 58368  }
  0x14   :  { %v122_v8 = vpop.eup %121 }
  0x15   :  { %v124_v11 = vpop.eup %123  ;;  %v67_v12 = vmul.f32 %v122_v8, %v63_v5  ;;  %v57_v16 = vmul.f32 %v122_v8, %v53_v9 }
  0x16   :  { %v49_v13 = vadd.f32 %v124_v11, %v122_v8  ;;  %v68_v14 = vmul.f32 %v124_v11, %v64_v7  ;;  %v58_v17 = vmul.f32 %v124_v11, %v54_v10 }
  0x18   :  { %50 = vadd.xlane.f32.xlu0 %v49_v13  ;;  %v69_v15 = vadd.f32 %v68_v14, %v67_v12  ;;  %v59_v18 = vadd.f32 %v58_v17, %v57_v16 }
  0x1a   :  { %70 = vadd.xlane.f32.xlu1 %v69_v15 }
  0x20   :  { %60 = vadd.xlane.f32.xlu0 %v59_v18 }
  0x8b   :  { %v51_v19 = vpop.xlane.xlu0 %50 }
  0x8c   :  { %125 = vrcp.f32 %v51_v19  ;;  %v83_v23 = vand.u32 2147483648, %v51_v19  ;;  %v81_v26 = vand.u32 2147483647, %v51_v19  ;;  %vm77_vm1 = vweird.f32 %v51_v19 }
  0x8d   :  { %v71_v28 = vpop.xlane.xlu1 %70 }
  0x8e   :  { %v84_v29 = vor.u32 1.1754944e-38, %v83_v23  ;;  %vm82_vm3 = vcmp.eq.f32.partialorder %v81_v26, 8.507059e+37 }
  0x92   :  { %v126_v20 = vpop.eup %125 }
  0x93   :  { %v73_v21 = vmul.f32 %v126_v20, %v51_v19  ;;  %vm78_vm0 = vweird.f32 %v126_v20  ;;  %v61_v30 = vpop.xlane.xlu0 %60 }
  0x94   :  { %vm79_vm2 = vmor %vm77_vm1, %vm78_vm0 }
  0x95   :  { %v74_v22 = vsub.f32 1.0, %v73_v21 }
  0x97   :  { %v75_v25 = vmul.f32 %v126_v20, %v74_v22 }
  0x99   :  { %v76_v27 = vadd.f32 %v126_v20, %v75_v25 }
  0x9b   :  { %v80_v32 = vsel %vm79_vm2, %v126_v20, %v76_v27 }
  0x9c   :  { %v85_v33 = vsel %vm82_vm3, %v84_v29, %v80_v32 }
  0x9d   :  { %v87_v34 = vmul.f32 %v85_v33, %v71_v28  ;;  %v86_v35 = vmul.f32 %v85_v33, %v61_v30 }
  0x9f   :  { %v94_v36 = vperm.slane %v87_v34, %v90_v31  ;;  %v91_v37 = vperm.slane %v86_v35, %v90_v31 }
  0xa1   :  { %v97_v38 = vsel %vm96_vm4, %v91_v37, %v94_v36 }
  0xa2   :  { %99 = vst.msk [vmem:[#allocation7] sm:$0x3] %vm98_vm5, %v97_v38 }
  0xa3   :  { %110 = dma.vmem_to_hbm [thread:$0]  %s106_s1, 32, %s108_s21, [#allocation4]  }
  0xa4   :  { %203 = dma.done.wait [#allocation4], 32  }
  0xa5   :  { %204 = vsyncadd [#allocation4], 4294967264 }
  0xa6   :  { %115 = vsyncpa [#allocation3], 1 }
  0xa7   :  { %116 = vsyncpa [#allocation6], 1 }
  0xa8   :  { %117 = vsyncpa [#allocation4], 1 }

</bundles_post_ra>
